<compile_context>
chip_gen: v5e
topology: v5e:2x2
jax: 0.10.0
libtpu: 0.0.40
codegen_flags: <defaults>
</compile_context>

<pallas_src>
import jax
import jax.numpy as jnp
from jax import lax
from jax.experimental import pallas as pl
from jax.experimental.pallas import tpu as pltpu

_LANE = 128


def _gating_kernel(x_ref, w1_ref, b1_ref, w2_ref, b2_ref, out_ref):
    # x_ref  : (TM, D_in)      input tile, natural (token, feature) layout
    # w1_ref : (H, D_in)       linear_1 weight (PyTorch layout), VMEM-resident
    # b1_ref : (H, 1)   f32    linear_1 bias as a column (broadcasts over lanes)
    # w2_ref : (1, H)          linear_2 weight (PyTorch layout), VMEM-resident
    # b2_ref : (1, 1)   f32    linear_2 bias
    # out_ref: (1, TM)         gating values, tokens along lanes (lane-dense)

    # h = W1 @ x^T -> (H, TM): contract the feature dim of both operands so the
    # token axis lands in lanes; no HBM- or VMEM-level transpose needed.
    h = lax.dot_general(
        w1_ref[...], x_ref[...],
        dimension_numbers=(((1,), (1,)), ((), ())),
        preferred_element_type=jnp.float32,
    )
    h = jnp.maximum(h + b1_ref[...], 0.0)                     # bias + ReLU (f32, VPU)

    logits = jnp.dot(w2_ref[...].astype(jnp.float32), h,      # (1, TM)  (MXU)
                     preferred_element_type=jnp.float32)
    logits = logits + b2_ref[...]

    out_ref[...] = jax.nn.sigmoid(logits).astype(out_ref.dtype)   # EUP


def gating_layer_forward(tag_vectors, w1, b1, w2, b2, *, tm=8192):
    """Eval-mode GatingLayer forward.

    tag_vectors: (..., in_features)   any float dtype (consumed natively)
    w1: (dim_feedforward, in_features)   b1: (dim_feedforward,)
    w2: (1, dim_feedforward)             b2: (1,)
    returns: (...,) gating values (last feature dim squeezed away).
    """
    lead_shape = tag_vectors.shape[:-1]
    d_in = tag_vectors.shape[-1]
    h_dim = w1.shape[0]

    x2 = tag_vectors.reshape(-1, d_in)          # natural layout, native dtype
    n_tok = x2.shape[0]
    compute_dtype = x2.dtype

    # Tile-size policy -------------------------------------------------------
    # Keep tm a multiple of 128 and cap it so (double-buffered x tile) +
    # (f32 h intermediate) stay well under the 32 MiB scoped-VMEM default
    # (conservative for v7x; trivially safe on v5e/v6e).
    tm = max(_LANE, (tm // _LANE) * _LANE)
    bytes_per_tok = 2 * d_in * x2.dtype.itemsize + 4 * h_dim
    vmem_budget = 16 * 1024 * 1024
    max_tm = max(_LANE, (vmem_budget // bytes_per_tok) // _LANE * _LANE)
    tm = min(tm, max_tm)

    if n_tok > tm:
        tm_eff = tm                              # big lane-dense tiles, grid >= 2
    else:
        # Small / medium N: try to keep >= 2 grid steps (v7x has 2 TensorCores)
        # with 128-aligned tiles; tiny N runs as a single full-array block.
        half = (pl.cdiv(n_tok, 2) // _LANE) * _LANE
        tm_eff = half if half >= _LANE else n_tok

    grid = (pl.cdiv(n_tok, tm_eff),)             # ragged tail masked by Pallas

    # Tiny weight/bias arrays; match weights to the input compute dtype so the
    # MXU sees a single-dtype contraction, keep biases in f32.
    w1c = w1.astype(compute_dtype)
    w2c = w2.astype(compute_dtype)
    b1_col = b1.reshape(h_dim, 1).astype(jnp.float32)
    b2_col = b2.reshape(1, 1).astype(jnp.float32)

    out = pl.pallas_call(
        _gating_kernel,
        out_shape=jax.ShapeDtypeStruct((1, n_tok), compute_dtype),
        grid_spec=pltpu.PrefetchScalarGridSpec(
            num_scalar_prefetch=0,
            grid=grid,
            in_specs=[
                pl.BlockSpec((tm_eff, d_in), lambda i: (i, 0)),   # x tile (streamed)
                pl.BlockSpec((h_dim, d_in), lambda i: (0, 0)),    # W1 resident
                pl.BlockSpec((h_dim, 1), lambda i: (0, 0)),       # b1 resident
                pl.BlockSpec((1, h_dim), lambda i: (0, 0)),       # W2 resident
                pl.BlockSpec((1, 1), lambda i: (0, 0)),           # b2 resident
            ],
            out_specs=pl.BlockSpec((1, tm_eff), lambda i: (0, i)),  # lane-dense
        ),
        compiler_params=pltpu.CompilerParams(
            dimension_semantics=("parallel",),
        ),
    )(x2, w1c, b1_col, w2c, b2_col)

    return out[0, :].reshape(lead_shape)


if __name__ == "__main__":
    in_features = 32
    dim_feedforward = 64
    batch, seq = 2, 8

    key = jax.random.PRNGKey(0)
    k_x, k_w1, k_b1, k_w2, k_b2 = jax.random.split(key, 5)

    tag_vectors = jax.random.normal(k_x, (batch, seq, in_features), dtype=jnp.float32)
    w1 = jax.random.normal(k_w1, (dim_feedforward, in_features), dtype=jnp.float32) * 0.1
    b1 = jax.random.normal(k_b1, (dim_feedforward,), dtype=jnp.float32) * 0.1
    w2 = jax.random.normal(k_w2, (1, dim_feedforward), dtype=jnp.float32) * 0.1
    b2 = jax.random.normal(k_b2, (1,), dtype=jnp.float32) * 0.1

    out = gating_layer_forward(tag_vectors, w1, b1, w2, b2)
    out = jax.block_until_ready(out)

    # Pure-JAX reference (eval-mode forward, identical math to PyTorch module).
    x_flat = tag_vectors.reshape(-1, in_features)
    h_ref = jnp.maximum(x_flat @ w1.T + b1, 0.0)
    ref = jax.nn.sigmoid(h_ref @ w2.T + b2)[:, 0].reshape(batch, seq)

    assert out.shape == (batch, seq)
    assert jnp.allclose(out, ref, atol=1e-5, rtol=1e-5), "Pallas GatingLayer mismatch"

    print("KERNEL_OK")
</pallas_src>

<mosaic_0001>
module attributes {stable_mosaic.version = 11 : i64} {
  func.func @_gating_kernel(%arg0: i32, %arg1: memref<16x32xf32, #tpu.memory_space<vmem>>, %arg2: memref<64x32xf32, #tpu.memory_space<vmem>>, %arg3: memref<64x1xf32, #tpu.memory_space<vmem>>, %arg4: memref<1x64xf32, #tpu.memory_space<vmem>>, %arg5: memref<1x1xf32, #tpu.memory_space<vmem>>, %arg6: memref<1x16xf32, #tpu.memory_space<vmem>>) attributes {dimension_semantics = [#tpu.dimension_semantics<parallel>], iteration_bounds = array<i64: 1>, scalar_prefetch = 0 : i64, scratch_operands = 0 : i64, tpu.core_type = #tpu.core_type<tc>, window_params = [{transform_indices = @transform_0, window_bounds = array<i64: 16, 32>}, {pipeline_mode = #tpu.pipeline_mode<synchronous>, transform_indices = @transform_1, window_bounds = array<i64: 64, 32>}, {pipeline_mode = #tpu.pipeline_mode<synchronous>, transform_indices = @transform_2, window_bounds = array<i64: 64, 1>}, {pipeline_mode = #tpu.pipeline_mode<synchronous>, transform_indices = @transform_3, window_bounds = array<i64: 1, 64>}, {pipeline_mode = #tpu.pipeline_mode<synchronous>, transform_indices = @transform_4, window_bounds = array<i64: 1, 1>}, {transform_indices = @transform_5, window_bounds = array<i64: 1, 16>}]} {
    %c0 = arith.constant 0 : index
    %c0_0 = arith.constant 0 : index
    %0 = vector.load %arg2[%c0, %c0_0] : memref<64x32xf32, #tpu.memory_space<vmem>>, vector<64x32xf32>
    %c0_1 = arith.constant 0 : index
    %c0_2 = arith.constant 0 : index
    %1 = vector.load %arg1[%c0_1, %c0_2] : memref<16x32xf32, #tpu.memory_space<vmem>>, vector<16x32xf32>
    %cst = arith.constant dense<0.000000e+00> : vector<64x16xf32>
    %2 = tpu.matmul %0, %1, %cst {dimension_numbers = #tpu.dot_dimension_numbers<[1], [1], [0], [0], [0, 0, 1, 0], [], []>} : vector<64x32xf32>, vector<16x32xf32>, vector<64x16xf32> -> vector<64x16xf32>
    %c0_3 = arith.constant 0 : index
    %c0_4 = arith.constant 0 : index
    %3 = vector.load %arg3[%c0_3, %c0_4] : memref<64x1xf32, #tpu.memory_space<vmem>>, vector<64x1xf32>
    %4 = vector.broadcast %3 : vector<64x1xf32> to vector<64x16xf32>
    %5 = arith.addf %2, %4 : vector<64x16xf32>
    %cst_5 = arith.constant 0.000000e+00 : f32
    %6 = vector.broadcast %cst_5 : f32 to vector<64x16xf32>
    %7 = arith.maximumf %5, %6 : vector<64x16xf32>
    %c0_6 = arith.constant 0 : index
    %c0_7 = arith.constant 0 : index
    %8 = vector.load %arg4[%c0_6, %c0_7] : memref<1x64xf32, #tpu.memory_space<vmem>>, vector<1x64xf32>
    %cst_8 = arith.constant dense<0.000000e+00> : vector<1x16xf32>
    %9 = tpu.matmul %8, %7, %cst_8 {dimension_numbers = #tpu.dot_dimension_numbers<[1], [0], [0], [1], [0, 0, 1, 1], [], []>} : vector<1x64xf32>, vector<64x16xf32>, vector<1x16xf32> -> vector<1x16xf32>
    %c0_9 = arith.constant 0 : index
    %c0_10 = arith.constant 0 : index
    %10 = vector.load %arg5[%c0_9, %c0_10] : memref<1x1xf32, #tpu.memory_space<vmem>>, vector<1x1xf32>
    %11 = vector.broadcast %10 : vector<1x1xf32> to vector<1x16xf32>
    %12 = arith.addf %9, %11 : vector<1x16xf32>
    %13 = arith.negf %12 : vector<1x16xf32>
    %14 = math.exp %13 : vector<1x16xf32>
    %cst_11 = arith.constant 1.000000e+00 : f32
    %15 = vector.broadcast %cst_11 : f32 to vector<1x16xf32>
    %16 = arith.addf %15, %14 : vector<1x16xf32>
    %17 = arith.divf %15, %16 : vector<1x16xf32>
    %c0_12 = arith.constant 0 : index
    %c0_13 = arith.constant 0 : index
    %18 = vector.load %arg6[%c0_12, %c0_13] : memref<1x16xf32, #tpu.memory_space<vmem>>, vector<1x16xf32>
    tpu.vector_store %arg6[%c0_12, %c0_13], %17 {strides = array<i32>} : memref<1x16xf32, #tpu.memory_space<vmem>>, vector<1x16xf32>,
    return
  }
  func.func @transform_0(%arg0: i32) -> (i32, i32) {
    %c0_i32 = arith.constant 0 : i32
    %c0_i32_0 = arith.constant 0 : i32
    return %arg0, %c0_i32 : i32, i32
  }
  func.func @transform_1(%arg0: i32) -> (i32, i32) {
    %c0_i32 = arith.constant 0 : i32
    %c0_i32_0 = arith.constant 0 : i32
    %c0_i32_1 = arith.constant 0 : i32
    return %c0_i32, %c0_i32_0 : i32, i32
  }
  func.func @transform_2(%arg0: i32) -> (i32, i32) {
    %c0_i32 = arith.constant 0 : i32
    %c0_i32_0 = arith.constant 0 : i32
    %c0_i32_1 = arith.constant 0 : i32
    return %c0_i32, %c0_i32_0 : i32, i32
  }
  func.func @transform_3(%arg0: i32) -> (i32, i32) {
    %c0_i32 = arith.constant 0 : i32
    %c0_i32_0 = arith.constant 0 : i32
    %c0_i32_1 = arith.constant 0 : i32
    return %c0_i32, %c0_i32_0 : i32, i32
  }
  func.func @transform_4(%arg0: i32) -> (i32, i32) {
    %c0_i32 = arith.constant 0 : i32
    %c0_i32_0 = arith.constant 0 : i32
    %c0_i32_1 = arith.constant 0 : i32
    return %c0_i32, %c0_i32_0 : i32, i32
  }
  func.func @transform_5(%arg0: i32) -> (i32, i32) {
    %c0_i32 = arith.constant 0 : i32
    %c0_i32_0 = arith.constant 0 : i32
    return %c0_i32, %arg0 : i32, i32
  }
}

</mosaic_0001>

<bundles_post_ra>
// kernel: tpu_custom_call.1
= control target key start
LH: loop header
LB: loop body
LE: loop exit
PB: predicated region body
PF: predicated region fallthrough
CT: control target
= control target key end

     0   :  { %s390_s0 = inlined_call_operand.vmem [shape: f32[16,32], index: 0, kind: input, shape index: {}]   ;;  %s391_s1 = inlined_call_operand.vmem [shape: f32[64,32], index: 1, kind: input, shape index: {}]   ;;  %s392_s2 = inlined_call_operand.vmem [shape: f32[64,1], index: 2, kind: input, shape index: {}]   ;;  %s393_s3 = inlined_call_operand.vmem [shape: f32[1,64], index: 3, kind: input, shape index: {}]   ;;  %s394_s4 = inlined_call_operand.<no memory space> [shape: f32[1,1], index: 4, kind: input, shape index: {}]   ;;  %s395_s5 = inlined_call_operand.hbm [shape: f32[1,16], index: 5, kind: output, shape index: {}]  }
   0x1   :  { %v10_v0 = vstv %s394_s4 }
   0x2   :  { %11 = vst [vmem:[#allocation2] sm:$0x1] %v10_v0 }
   0x3   :  { %v32_v1 = vld [vmem:[%s390_s0 + $0x8] sm:$0xff]  ;;  %vm81_vm0 = vcmask 261120   ;;  %v40_v2 = vld [vmem:[%s392_s2 + $0x38] sm:$0xff]  ;;  %v31_v3 = vld [vmem:[%s390_s0] sm:$0xff]  ;;  %v281_v4 = vmov 0  }
   0x4   :  { %242 = vmatpush.xpose.msk.msra.mxu2 %vm81_vm0, %v32_v1  ;;  %243 = vmatpush.xpose.msk.msra.mxu3 %vm81_vm0, %v32_v1  ;;  %v38_v5 = vld [vmem:[%s392_s2 + $0x28] sm:$0xff]  ;;  %v26_v6 = vld [vmem:[%s391_s1 + $0x18] sm:$0xff]  ;;  %v29_v7 = vld [vmem:[%s391_s1 + $0x30] sm:$0xff] }
   0x5   :  { %230 = vmatpush.xpose.msk.msra.mxu0 %vm81_vm0, %v32_v1  ;;  %249 = vset.pattern.permute.xlu1 %v281_v4  ;;  %v36_v8 = vld [vmem:[%s392_s2 + $0x18] sm:$0xff]  ;;  %v23_v9 = vld [vmem:[%s391_s1] sm:$0xff] }
   0x6   :  { %248 = vset.pattern.permute.xlu0 %v281_v4  ;;  %68 = vperm.xlu1 %249, %v38_v5  }
   0x7   :  { %78 = vperm.xlu0 %248, %v40_v2   ;;  %250 = vset.pattern.permute.xlu2 %v281_v4 }
   0x8   :  { %244 = vmatpush.xpose.msk.msra.mxu2 %vm81_vm0, %v31_v3  ;;  %245 = vmatpush.xpose.msk.msra.mxu3 %vm81_vm0, %v31_v3 }
   0x9   :  { %231 = vmatpush.xpose.msk.msra.mxu0 %vm81_vm0, %v31_v3  ;;  %58 = vperm.xlu2 %250, %v36_v8  }
   0xa   :  { %12 = vsyncpa [#allocation4], 0  ;;  %v37_v10 = vld [vmem:[%s392_s2 + $0x20] sm:$0xff]  ;;  %v39_v11 = vld [vmem:[%s392_s2 + $0x30] sm:$0xff]  ;;  %vm169_vm1 = vcmask 523264   ;;  %s221_s30 = sshll.u32 %s395_s5, 4  ;;  %s222_s30 = int_to_ptr.hbm [resolvable:$true] %s221_s30 }
   0xb   :  { %235 = vmatmul.msk.f32.vlgmr.msra.gmra.mxu2 %vm81_vm0, %v26_v6  ;;  %238 = vmatmul.msk.f32.vlgmr.msra.gmra.mxu3 %vm81_vm0, %v29_v7  ;;  %v35_v12 = vld [vmem:[%s392_s2 + $0x10] sm:$0xff]  ;;  %v27_v13 = vld [vmem:[%s391_s1 + $0x20] sm:$0xff]  ;;  %v30_v14 = vld [vmem:[%s391_s1 + $0x38] sm:$0xff]  ;;  %vm212_vm5 = vcmask 122880  }
   0xc   :  { %232 = vmatmul.msk.f32.vlgmr.msra.gmra.mxu0 %vm81_vm0, %v23_v9  ;;  %v24_v15 = vld [vmem:[%s391_s1 + $0x8] sm:$0xff]  ;;  %v33_v16 = vld [vmem:[%s392_s2] sm:$0xff]  ;;  %v25_v20 = vld [vmem:[%s391_s1 + $0x10] sm:$0xff] }
   0xd   :  { %v34_v17 = vld [vmem:[%s392_s2 + $0x8] sm:$0xff]  ;;  %v162_v18 = vld [vmem:[#allocation2] sm:$0x1] }
   0xe   :  { %63 = vperm.xlu1 %249, %v37_v10   ;;  %v28_v19 = vld [vmem:[%s391_s1 + $0x28] sm:$0xff]  ;;  %v161_v53 = vld [vmem:[%s393_s3] sm:$0x1]  ;;  %s282_s3 = smov [#allocation3]  }
   0xf   :  { %73 = vperm.xlu0 %248, %v39_v11   ;;  %s219_s28 = sshll.u32 %s282_s3, 4  ;;  %s220_s28 = int_to_ptr.vmem [resolvable:$true] %s219_s28 }
  0x11   :  { %53 = vperm.xlu2 %250, %v35_v12  }
  0x13   :  { %236 = vmatmul.msk.f32.gmra.mxu2 %vm81_vm0, %v27_v13  ;;  %239 = vmatmul.msk.f32.gmra.mxu3 %vm81_vm0, %v30_v14 }
  0x14   :  { %233 = vmatmul.msk.f32.gmra.mxu0 %vm81_vm0, %v24_v15 }
  0x16   :  { %43 = vperm.xlu1 %249, %v33_v16  }
  0x17   :  { %48 = vperm.xlu0 %248, %v34_v17  }
  0x19   :  { %165 = vperm.xlu2 %250, %v162_v18  }
  0x1b   :  { %237 = vmatmul.msk.f32.gmra.mxu2 %vm81_vm0, %v28_v19 }
  0x1c   :  { %234 = vmatmul.msk.f32.gmra.mxu0 %vm81_vm0, %v25_v20 }
  0x63   :  { %v59_v32 = vpop.permute.xlu2 %58 }
  0x6b   :  { %v54_v42 = vpop.permute.xlu2 %53 }
  0x73   :  { %v166_v54 = vpop.permute.xlu2 %165 }
  0x74   :  { %v168_v55 = vperm.slane %v166_v54, 0 }
  0x78   :  { %v69_v25 = vpop.permute.xlu1 %68 }
  0x79   :  { %v79_v21 = vpop.permute.xlu0 %78 }
  0x80   :  { %v64_v34 = vpop.permute.xlu1 %63 }
  0x81   :  { %v74_v26 = vpop.permute.xlu0 %73 }
  0x88   :  { %v44_v46 = vpop.permute.xlu1 %43 }
  0x89   :  { %v129_v22 = vpop.f32.mrf.mxu0  ;;  %v49_v43 = vpop.permute.xlu0 %48 }
  0x8a   :  { %v130_v49 = vadd.f32 %v129_v22, %v44_v46 }
  0x8c   :  { %v153_v52 = vmax.f32 %v130_v49, 0.0 }
  0x8e   :  { %v138_v23 = vpop.f32.mrf.mxu2  ;;  %v147_v24 = vpop.f32.mrf.mxu3 }
  0x8f   :  { %v148_v30 = vadd.f32 %v147_v24, %v74_v26  ;;  %v139_v40 = vadd.f32 %v138_v23, %v59_v32 }
  0x91   :  { %v132_v27 = vpop.f32.mrf.mxu0  ;;  %v159_v35 = vmax.f32 %v148_v30, 0.0  ;;  %v156_v47 = vmax.f32 %v139_v40, 0.0 }
  0x92   :  { %v133_v48 = vadd.f32 %v132_v27, %v49_v43 }
  0x94   :  { %v154_v51 = vmax.f32 %v133_v48, 0.0 }
  0x96   :  { %v141_v28 = vpop.f32.mrf.mxu2  ;;  %v150_v29 = vpop.f32.mrf.mxu3 }
  0x97   :  { %v151_v31 = vadd.f32 %v150_v29, %v79_v21  ;;  %v142_v37 = vadd.f32 %v141_v28, %v64_v34 }
  0x99   :  { %v160_v33 = vmax.f32 %v151_v31, 0.0  ;;  %v135_v39 = vpop.f32.mrf.mxu0  ;;  %v157_v44 = vmax.f32 %v142_v37, 0.0 }
  0x9a   :  { %v136_v45 = vadd.f32 %v135_v39, %v54_v42 }
  0x9b   :  { %181 = vmatpush.msra.mxu1 %v160_v33 }
  0x9c   :  { %v155_v50 = vmax.f32 %v136_v45, 0.0 }
  0x9d   :  { %182 = vmatpush.msra.mxu1 %v159_v35 }
  0x9e   :  { %v144_v36 = vpop.f32.mrf.mxu2 }
  0x9f   :  { %v145_v38 = vadd.f32 %v144_v36, %v69_v25 }
  0xa1   :  { %v158_v41 = vmax.f32 %v145_v38, 0.0 }
  0xa3   :  { %183 = vmatpush.msra.mxu1 %v158_v41 }
  0xa5   :  { %184 = vmatpush.msra.mxu1 %v157_v44 }
  0xa7   :  { %185 = vmatpush.msra.mxu1 %v156_v47 }
  0xa9   :  { %186 = vmatpush.msra.mxu1 %v155_v50 }
  0xab   :  { %187 = vmatpush.msra.mxu1 %v154_v51 }
  0xad   :  { %188 = vmatpush.msra.mxu1 %v153_v52 }
  0xae   :  { %240 = vmatmul.msk.f32.vlgmr.msra.gmra.mxu1 %vm169_vm1, %v161_v53 }
 0x12b   :  { %v190_v56 = vpop.f32.mrf.mxu1 }
 0x12c   :  { %v191_v57 = vadd.f32 %v190_v56, %v168_v55 }
 0x12e   :  { %v241_v58 = vmul.f32 -1.442695, %v191_v57 }
 0x130   :  { %251 = vpow2.f32 %v241_v58 }
 0x136   :  { %v252_v59 = vpop.eup %251 }
 0x137   :  { %v196_v60 = vadd.f32 1.0, %v252_v59 }
 0x139   :  { %253 = vrcp.f32 %v196_v60  ;;  %v208_v0 = vand.u32 2147483648, %v196_v60  ;;  %v206_v2 = vand.u32 2147483647, %v196_v60  ;;  %vm202_vm3 = vweird.f32 %v196_v60 }
 0x13b   :  { %v209_v4 = vor.u32 1.1754944e-38, %v208_v0  ;;  %vm207_vm6 = vcmp.eq.f32.partialorder %v206_v2, 8.507059e+37 }
 0x13f   :  { %v254_v61 = vpop.eup %253 }
 0x140   :  { %v198_v62 = vmul.f32 %v254_v61, %v196_v60  ;;  %vm203_vm2 = vweird.f32 %v254_v61 }
 0x141   :  { %vm204_vm4 = vmor %vm202_vm3, %vm203_vm2 }
 0x142   :  { %v199_v63 = vsub.f32 1.0, %v198_v62 }
 0x144   :  { %v200_v1 = vmul.f32 %v254_v61, %v199_v63 }
 0x146   :  { %v201_v3 = vadd.f32 %v254_v61, %v200_v1 }
 0x148   :  { %v205_v5 = vsel %vm204_vm4, %v254_v61, %v201_v3 }
 0x149   :  { %v210_v6 = vsel %vm207_vm6, %v209_v4, %v205_v5 }
 0x14a   :  { %213 = vst.msk [vmem:[#allocation3] sm:$0x1] %vm212_vm5, %v210_v6 }
 0x14b   :  { %224 = dma.vmem_to_hbm [thread:$0]  %s220_s28, 16, %s222_s30, [#allocation4]  }
 0x14c   :  { %279 = dma.done.wait [#allocation4], 16  }
 0x14d   :  { %280 = vsyncadd [#allocation4], 4294967280 }
 0x14e   :  { %229 = vsyncpa [#allocation4], 1 }

</bundles_post_ra>
